<compile_context>
chip_gen: v6e
topology: v6e:2x2x1
jax: 0.10.0
libtpu: 0.0.40
codegen_flags: <defaults>
</compile_context>

<pallas_src>
import math

import numpy as np
import jax
import jax.numpy as jnp
from jax.experimental import pallas as pl
from jax.experimental.pallas import tpu as pltpu

BN_EPS = 1e-5
LANES = 128

# ---------------------------------------------------------------------------
# Fixed geometry for this config: N=2 images of 3x16x16.
# ---------------------------------------------------------------------------
N_BATCH = 2
H_IN = W_IN = 16
CHANNELS = (32, 64, 128, 128)
NUM_CLASSES = 128

# stage 1: 16x16 feature maps, spatially padded to 18x18
HP1, WP1 = H_IN + 2, W_IN + 2                  # 18, 18
M1 = N_BATCH * HP1 * WP1                       # 648
G1 = 24                                        # guard rows >= WP1 + 1 = 19, mult of 8
MP1 = M1 + 2 * G1                              # 696

# stage 2: 8x8 feature maps (after stride-2 layer1), padded to 10x10
H2 = W2 = 8
HP2, WP2 = H2 + 2, W2 + 2                      # 10, 10
M2 = N_BATCH * HP2 * WP2                       # 200
G2 = 16                                        # guard rows >= WP2 + 1 = 11
MP2 = M2 + 2 * G2                              # 232

# head: 4x4 after AvgPool2d(2)
H3 = W3 = 4
MO = N_BATCH * H3 * W3                         # 32


# ---------------------------------------------------------------------------
# The single fused kernel
# ---------------------------------------------------------------------------
def _resnet_kernel(x_ref, p_ref, m1_ref, m2_ref, sb_ref,
                   ws_ref, w11_ref, w1d_ref, w12_ref,
                   w21_ref, w2d_ref, w22_ref,
                   w31_ref, w3d_ref, w32_ref, wfc_ref,
                   o_ref,
                   a1, t1, ca, cb):
    f32 = jnp.float32
    bf16 = jnp.bfloat16

    def sb(i):  # (1, 128) scale/bias row, broadcast over rows
        return sb_ref[pl.ds(i, 1), :]

    def conv3x3(src_ref, guard, m, wp, w_ref, cin):
        """3x3 conv as a K-packed implicit GEMM.

        group = 128 // cin shifted-row slabs are lane-rolled into disjoint
        cin-wide bands and summed (rolls hit the XLU slot, adds the VPU), so one
        MXU pass contracts `group` taps: 3 matmuls for cin=32, 5 for cin=64,
        9 for cin=128 (instead of 9 everywhere).  Lanes >= cin are zero by
        construction, so the wrapped-around lanes of a roll contribute nothing.
        """
        group = max(1, LANES // cin)
        acc = None
        for g in range(w_ref.shape[0]):
            op = None
            for j in range(group):
                tap = g * group + j
                if tap >= 9:
                    break
                kh, kw = divmod(tap, 3)
                off = (kh - 1) * wp + (kw - 1)
                slab = src_ref[pl.ds(guard + off, m), :]
                if j:
                    slab = pltpu.roll(slab, shift=j * cin, axis=1)
                op = slab if op is None else op + slab
            d = jnp.dot(op.astype(bf16), w_ref[g], preferred_element_type=f32)
            acc = d if acc is None else acc + d
        return acc

    def bn_act(acc, si, res=None, relu=True, mask=None):
        out = acc * sb(si) + sb(si + 1)
        if res is not None:
            out = out + res
        if relu:
            out = jnp.maximum(out, 0.0)
        if mask is not None:
            out = out * mask          # zero halo rows -> conv zero-padding
        return out

    def subsample(dst_ref, src_ref):
        """Stride-2 pick of stage-1 interior rows into stage-2 interior rows.

        Pure strided vld + vst work (replaces the old (200,648) selection
        matmuls); 16 slices of 8 rows each.
        """
        for n in range(N_BATCH):
            for h in range(H2):
                src = G1 + n * HP1 * WP1 + (2 * h + 1) * WP1 + 1
                dst = G2 + n * HP2 * WP2 + (h + 1) * WP2 + 1
                dst_ref[pl.ds(dst, W2), :] = src_ref[pl.ds(src, W2, stride=2), :]

    # -- zero only guard/halo rows: interiors are always fully overwritten -----
    a1[pl.ds(0, G1), :] = jnp.zeros((G1, LANES), f32)
    a1[pl.ds(G1 + M1, G1), :] = jnp.zeros((G1, LANES), f32)
    ca[...] = jnp.zeros(ca.shape, f32)     # small stage-2 buffers: full zero
    cb[...] = jnp.zeros(cb.shape, f32)     # (guard + halo rows must be 0)

    m1 = m1_ref[...]                 # (M1, 1) interior mask, stage 1
    m2 = m2_ref[...]                 # (M2, 1) interior mask, stage 2

    # ---- stem: conv3x3(3->32) + bn + relu, ONE im2col matmul (27-lane K) ----
    stem = bn_act(jnp.dot(x_ref[...], ws_ref[...], preferred_element_type=f32),
                  0, mask=m1)
    a1[pl.ds(G1, M1), :] = stem

    # ---- layer1: BasicBlock(32->32, stride 2, 1x1 downsample) ---------------
    subsample(cb, a1)                            # stride-2 stem -> downsample input
    o11 = bn_act(conv3x3(a1, G1, M1, WP1, w11_ref, 32), 2)    # full-res conv1
    t1[pl.ds(G1, M1), :] = o11
    subsample(ca, t1)                            # stride-2 pick of conv1 output
    acc1 = conv3x3(ca, G2, M2, WP2, w12_ref, 32)
    res1 = jnp.dot(cb[pl.ds(G2, M2), :].astype(bf16), w1d_ref[...],
                   preferred_element_type=f32) * sb(4) + sb(5)
    out1 = bn_act(acc1, 6, res=res1, mask=m2)
    cb[pl.ds(G2, M2), :] = out1

    # ---- layer2: BasicBlock(32->64, stride 1, 1x1 downsample) ---------------
    o21 = bn_act(conv3x3(cb, G2, M2, WP2, w21_ref, 32), 8, mask=m2)
    ca[pl.ds(G2, M2), :] = o21
    acc2 = conv3x3(ca, G2, M2, WP2, w22_ref, 64)
    res2 = jnp.dot(cb[pl.ds(G2, M2), :].astype(bf16), w2d_ref[...],
                   preferred_element_type=f32) * sb(10) + sb(11)
    out2 = bn_act(acc2, 12, res=res2, mask=m2)
    cb[pl.ds(G2, M2), :] = out2

    # ---- layer3: BasicBlock(64->128, stride 1, 1x1 downsample) --------------
    o31 = bn_act(conv3x3(cb, G2, M2, WP2, w31_ref, 64), 14, mask=m2)
    ca[pl.ds(G2, M2), :] = o31
    acc3 = conv3x3(ca, G2, M2, WP2, w32_ref, 128)
    res3 = jnp.dot(cb[pl.ds(G2, M2), :].astype(bf16), w3d_ref[...],
                   preferred_element_type=f32) * sb(16) + sb(17)
    out3 = bn_act(acc3, 18, res=res3, mask=m2)
    cb[pl.ds(G2, M2), :] = out3

    # ---- AvgPool2d(2) + fc (1x1 conv with bias) ------------------------------
    pooled = jnp.dot(p_ref[...], cb[pl.ds(G2, M2), :].astype(bf16),
                     preferred_element_type=f32)
    o_ref[...] = jnp.dot(pooled.astype(bf16), wfc_ref[...],
                         preferred_element_type=f32) + sb(20)


# ---------------------------------------------------------------------------
# pltpu.roll direction probe (jnp.roll-like => True).  The packed-tap weight
# band layout is built to match whichever direction the hardware rotate
# implements, so the conv packing is direction-proof.
# ---------------------------------------------------------------------------
def _detect_roll_forward():
    def probe_kernel(x_ref, o_ref):
        o_ref[...] = pltpu.roll(x_ref[...], shift=1, axis=1)

    lanes = jnp.tile(jnp.arange(LANES, dtype=jnp.float32)[None, :], (8, 1))
    rolled = pl.pallas_call(
        probe_kernel,
        out_shape=jax.ShapeDtypeStruct((8, LANES), jnp.float32),
    )(lanes)
    return bool(rolled[0, 1] == 0.0)


# ---------------------------------------------------------------------------
# Host-side constant matrices (avgpool matrix, interior masks)
# ---------------------------------------------------------------------------
def _build_geometry_operands():
    P = np.zeros((MO, M2), np.float32)       # AvgPool2d(2) over the 8x8 valid region
    for n in range(N_BATCH):
        for h in range(H3):
            for w in range(W3):
                r = n * H3 * W3 + h * W3 + w
                for dh in range(2):
                    for dw in range(2):
                        c = n * HP2 * WP2 + (2 * h + 1 + dh) * WP2 + (2 * w + 1 + dw)
                        P[r, c] = 0.25

    m1 = np.zeros((M1, 1), np.float32)
    for n in range(N_BATCH):
        for hp in range(1, HP1 - 1):
            for wp in range(1, WP1 - 1):
                m1[n * HP1 * WP1 + hp * WP1 + wp, 0] = 1.0

    m2 = np.zeros((M2, 1), np.float32)
    for n in range(N_BATCH):
        for hp in range(1, HP2 - 1):
            for wp in range(1, WP2 - 1):
                m2[n * HP2 * WP2 + hp * WP2 + wp, 0] = 1.0

    return jnp.asarray(P, jnp.bfloat16), jnp.asarray(m1), jnp.asarray(m2)


# ---------------------------------------------------------------------------
# Deterministic parameter construction (mirrors the module __init__)
# ---------------------------------------------------------------------------
def init_conv(key, cout, cin, k):
    n = k * k * cout
    return jax.random.normal(key, (cout, cin, k, k), jnp.float32) * math.sqrt(2.0 / n)


def bn_fold(c):
    gamma, beta = jnp.ones((c,), jnp.float32), jnp.zeros((c,), jnp.float32)
    mean, var = jnp.zeros((c,), jnp.float32), jnp.ones((c,), jnp.float32)
    scale = gamma / jnp.sqrt(var + BN_EPS)
    bias = beta - mean * scale
    return scale, bias


def make_block_params(key, inplanes, planes, downsample):
    k1, k2, k3 = jax.random.split(key, 3)
    p = {"conv1_w": init_conv(k1, planes, inplanes, 3),
         "conv2_w": init_conv(k2, planes, planes, 3)}
    p["bn1_scale"], p["bn1_bias"] = bn_fold(planes)
    p["bn2_scale"], p["bn2_bias"] = bn_fold(planes)
    if downsample:
        p["ds_w"] = init_conv(k3, planes, inplanes, 1)
        p["ds_bn_scale"], p["ds_bn_bias"] = bn_fold(planes)
    return p


def make_resnet_params(key, channels=CHANNELS, layers=(1, 1, 1), num_classes=NUM_CLASSES):
    keys = jax.random.split(key, 1 + sum(layers) + 2)
    params = {"conv1_w": init_conv(keys[0], channels[0], 3, 3)}
    params["bn1_scale"], params["bn1_bias"] = bn_fold(channels[0])

    inplanes = channels[0]
    strides = (2, 1, 1)
    layer_params, kidx = [], 1
    for planes, nblocks, stride in zip(channels[:3], layers, strides):
        blocks = []
        for bi in range(nblocks):
            s = stride if bi == 0 else 1
            ds = (bi == 0) and (s != 1 or inplanes != planes)
            blocks.append(make_block_params(keys[kidx], inplanes, planes, ds))
            kidx += 1
            inplanes = planes
        layer_params.append(blocks)
    params["layers"] = layer_params

    params["fc_w"] = init_conv(keys[kidx], num_classes, channels[-1], 1)
    bound = 1.0 / math.sqrt(channels[-1])
    params["fc_b"] = jax.random.uniform(keys[kidx + 1], (num_classes,), jnp.float32,
                                        -bound, bound)
    return params


# ---------------------------------------------------------------------------
# One-time weight layout preparation (hoisted out of the forward pass)
# ---------------------------------------------------------------------------
def prepare_operands(params):
    roll_forward = _detect_roll_forward()

    def pack_taps(w):
        """(Cout,Cin,3,3) -> (ceil(9/g),128,128) bf16 with g=128//Cin taps per matmul.

        Band j (lanes [j*Cin, (j+1)*Cin)) holds the weights of the tap whose
        activation slab the kernel rolls by j*Cin lanes; if the hardware rotate
        goes the other way the bands are mirrored to match.
        """
        cout, cin = w.shape[0], w.shape[1]
        g = max(1, LANES // cin)
        n_mm = (9 + g - 1) // g
        t = jnp.transpose(w, (2, 3, 1, 0)).reshape(9, cin, cout)   # (tap, cin, cout)
        out = jnp.zeros((n_mm, LANES, LANES), jnp.float32)
        for tap in range(9):
            mm, j = divmod(tap, g)
            band = j if (roll_forward or j == 0) else (g - j)
            out = out.at[mm, band * cin:(band + 1) * cin, :cout].set(t[tap])
        return out.astype(jnp.bfloat16)

    def stem_mat(w):  # (Cout,Cin,3,3) -> (128,128), rows = (kh,kw,cin) im2col order
        cout, cin = w.shape[0], w.shape[1]
        t = jnp.transpose(w, (2, 3, 1, 0)).reshape(9 * cin, cout)   # (27, 32)
        return jnp.pad(t, ((0, LANES - 9 * cin), (0, LANES - cout))).astype(jnp.bfloat16)

    def mat1(w):  # (Cout,Cin,1,1) -> (128, 128) bf16, rows = Cin, cols = Cout
        cout, cin = w.shape[0], w.shape[1]
        m = jnp.transpose(w[:, :, 0, 0])
        return jnp.pad(m, ((0, LANES - cin), (0, LANES - cout))).astype(jnp.bfloat16)

    def padv(v):
        return jnp.pad(v, (0, LANES - v.shape[0]))

    b1 = params["layers"][0][0]
    b2 = params["layers"][1][0]
    b3 = params["layers"][2][0]

    sb_rows = [
        padv(params["bn1_scale"]), padv(params["bn1_bias"]),      # 0,1  stem bn
        padv(b1["bn1_scale"]), padv(b1["bn1_bias"]),              # 2,3
        padv(b1["ds_bn_scale"]), padv(b1["ds_bn_bias"]),          # 4,5
        padv(b1["bn2_scale"]), padv(b1["bn2_bias"]),              # 6,7
        padv(b2["bn1_scale"]), padv(b2["bn1_bias"]),              # 8,9
        padv(b2["ds_bn_scale"]), padv(b2["ds_bn_bias"]),          # 10,11
        padv(b2["bn2_scale"]), padv(b2["bn2_bias"]),              # 12,13
        padv(b3["bn1_scale"]), padv(b3["bn1_bias"]),              # 14,15
        padv(b3["ds_bn_scale"]), padv(b3["ds_bn_bias"]),          # 16,17
        padv(b3["bn2_scale"]), padv(b3["bn2_bias"]),              # 18,19
        padv(params["fc_b"]),                                     # 20   fc bias
        jnp.zeros((LANES,), jnp.float32), jnp.zeros((LANES,), jnp.float32),
        jnp.zeros((LANES,), jnp.float32),                         # pad to 24 rows
    ]
    sb = jnp.stack(sb_rows).astype(jnp.float32)                   # (24, 128)

    P, m1, m2 = _build_geometry_operands()
    return (P, m1, m2, sb,
            stem_mat(params["conv1_w"]),
            pack_taps(b1["conv1_w"]), mat1(b1["ds_w"]), pack_taps(b1["conv2_w"]),
            pack_taps(b2["conv1_w"]), mat1(b2["ds_w"]), pack_taps(b2["conv2_w"]),
            pack_taps(b3["conv1_w"]), mat1(b3["ds_w"]), pack_taps(b3["conv2_w"]),
            mat1(params["fc_w"]))


# ---------------------------------------------------------------------------
# Forward pass (one pallas_call for the whole network)
# ---------------------------------------------------------------------------
def resnet_forward(operands, x_nchw):
    n = x_nchw.shape[0]
    # NCHW -> NHWC, zero-pad spatially, and im2col the stem's 3x3 patches so the
    # stem conv is a single K=27-lane (zero-padded to 128) matmul in the kernel.
    x = jnp.transpose(x_nchw, (0, 2, 3, 1)).astype(jnp.float32)        # (N,16,16,3)
    xp = jnp.pad(x, ((0, 0), (1, 1), (1, 1), (0, 0)))                  # (N,18,18,3)
    patches = jnp.concatenate(
        [xp[:, kh:kh + H_IN, kw:kw + W_IN, :] for kh in range(3) for kw in range(3)],
        axis=-1)                                                       # (N,16,16,27)
    im2col = jnp.zeros((n, HP1, WP1, LANES), jnp.float32)
    im2col = im2col.at[:, 1:1 + H_IN, 1:1 + W_IN, :27].set(patches)
    x_in = im2col.reshape(n * HP1 * WP1, LANES).astype(jnp.bfloat16)   # (M1, 128)

    out = pl.pallas_call(
        _resnet_kernel,
        out_shape=jax.ShapeDtypeStruct((MO, LANES), jnp.float32),
        scratch_shapes=[
            pltpu.VMEM((MP1, LANES), jnp.float32),   # a1: stem activations (18x18)
            pltpu.VMEM((MP1, LANES), jnp.float32),   # t1: layer1.conv1 full-res out
            pltpu.VMEM((MP2, LANES), jnp.float32),   # ca: stage-2 ping
            pltpu.VMEM((MP2, LANES), jnp.float32),   # cb: stage-2 pong
        ],
    )(x_in, *operands)

    out = out.reshape(n, H3, W3, LANES)
    return jnp.transpose(out, (0, 3, 1, 2))          # NHWC -> NCHW (2,128,4,4)


if __name__ == "__main__":
    key = jax.random.PRNGKey(0)
    pkey, xkey = jax.random.split(key)
    params = make_resnet_params(pkey)
    operands = prepare_operands(params)              # weight layouts hoisted, done once

    x = jax.random.normal(xkey, (N_BATCH, 3, H_IN, W_IN), jnp.float32)  # NCHW like PyTorch
    fwd = jax.jit(resnet_forward)
    out = fwd(operands, x)
    out = jax.block_until_ready(out)

    assert out.shape == (N_BATCH, NUM_CLASSES, H3, W3), out.shape
    assert bool(jnp.all(jnp.isfinite(out)))
    print("KERNEL_OK")
</pallas_src>

<mosaic_0001>
module attributes {stable_mosaic.version = 11 : i64} {
  func.func @probe_kernel(%arg0: memref<8x128xf32, #tpu.memory_space<vmem>>, %arg1: memref<8x128xf32, #tpu.memory_space<vmem>>) attributes {dimension_semantics = [], scalar_prefetch = 0 : i64, scratch_operands = 0 : i64, tpu.core_type = #tpu.core_type<tc>} {
    %c0 = arith.constant 0 : index
    %c0_0 = arith.constant 0 : index
    %0 = vector.load %arg0[%c0, %c0_0] : memref<8x128xf32, #tpu.memory_space<vmem>>, vector<8x128xf32>
    %c1_i32 = arith.constant 1 : i32
    %1 = tpu.dynamic_rotate %0 by %c1_i32 dim 1 : vector<8x128xf32>, i32 -> vector<8x128xf32>
    %c0_1 = arith.constant 0 : index
    %c0_2 = arith.constant 0 : index
    %2 = vector.load %arg1[%c0_1, %c0_2] : memref<8x128xf32, #tpu.memory_space<vmem>>, vector<8x128xf32>
    tpu.vector_store %arg1[%c0_1, %c0_2], %1 {strides = array<i32>} : memref<8x128xf32, #tpu.memory_space<vmem>>, vector<8x128xf32>,
    return
  }
}

</mosaic_0001>

<bundles_post_ra>
// kernel: tpu_custom_call.1
= control target key start
LH: loop header
LB: loop body
LE: loop exit
PB: predicated region body
PF: predicated region fallthrough
CT: control target
= control target key end

     0   :  { %6 = vsyncpa [#allocation3], 0  ;;  %s106_s0 = inlined_call_operand.hbm [shape: f32[8,128], index: 0, kind: input, shape index: {}]   ;;  %s107_s1 = inlined_call_operand.hbm [shape: f32[8,128], index: 1, kind: output, shape index: {}]  }
   0x1   :  { %7 = vsyncpa [#allocation4], 0  ;;  %s87_s6 = smov [#allocation2]  }
   0x2   :  { %s14_s7 = sshll.u32 %s87_s6, 4  ;;  %s15_s7 = int_to_ptr.vmem [resolvable:$true] %s14_s7 }
   0x3   :  { %s51_s8 = scalar_lea.vmem %s15_s7, 128  ;;  %p56_p1 = scmp.lt.s32.totalorder %s15_s7, %s15_s7 }
   0x4   :  { %p52_p0 = scmp.ne.s32.totalorder %s15_s7, %s51_s8  ;;  %p57_p2 = scmp.lt.s32.totalorder %s51_s8, %s51_s8 }
   0x6   :  { %p58_p3 = por %p57_p2, %p56_p1 }
   0x8   :  { %p59_p4 = pnand %p58_p3, %p52_p0 }
   0xa   :  { %62 = shalt.err (!%p59_p4)
}
   0xb   :  { %17 = dma.hbm_to_vmem [thread:$0]  %s106_s0, 128, %s15_s7, [#allocation3]  }
   0xc   :  { %83 = dma.done.wait [#allocation3], 128  }
   0xd   :  { %84 = vsyncadd [#allocation3], 4294967168  ;;  %v21_v0 = vld [vmem:[#allocation2] sm:$0xff]  ;;  %s88_s11 = smov 1   ;;  %s89_s12 = smov [#allocation5]  }
   0xe   :  { %22 = vrot.lane.b32.xlu0 %v21_v0, %s88_s11  ;;  %s31_s13 = sshll.u32 %s89_s12, 4  ;;  %s32_s13 = int_to_ptr.vmem [resolvable:$true] %s31_s13 }
   0xf   :  { %s63_s14 = scalar_lea.vmem %s32_s13, 128  ;;  %p68_p6 = scmp.lt.s32.totalorder %s32_s13, %s32_s13 }
  0x10   :  { %p64_p5 = scmp.ne.s32.totalorder %s32_s13, %s63_s14  ;;  %p69_p7 = scmp.lt.s32.totalorder %s63_s14, %s63_s14 }
  0x12   :  { %p70_p8 = por %p69_p7, %p68_p6 }
  0x14   :  { %p71_p9 = pnand %p70_p8, %p64_p5 }
  0x80   :  { %v23_v1 = vpop.permute.xlu0 %22 }
  0x81   :  { %24 = vst [vmem:[#allocation5] sm:$0xff] %v23_v1 }
  0x82   :  { %74 = shalt.err (!%p71_p9)
}
  0x83   :  { %34 = dma.vmem_to_hbm [thread:$0]  %s32_s13, 128, %s107_s1, [#allocation4]  }
  0x84   :  { %85 = dma.done.wait [#allocation4], 128  }
  0x85   :  { %86 = vsyncadd [#allocation4], 4294967168 }
  0x86   :  { %38 = vsyncpa [#allocation3], 1 }
  0x87   :  { %39 = vsyncpa [#allocation4], 1 }

</bundles_post_ra>
